<compile_context>
chip_gen: v7x
topology: tpu7x:2x2x1
jax: 0.10.0
libtpu: 0.0.40
codegen_flags: <defaults>
</compile_context>

<pallas_src>
import functools

import numpy as np
import jax
import jax.numpy as jnp
from jax import lax
from jax.experimental import pallas as pl
from jax.experimental.pallas import tpu as pltpu


# ---------------------------------------------------------------------------
# Parameter setup (matches the PyTorch __init__ exactly)
# ---------------------------------------------------------------------------
def make_positional_encoding_table(d_model: int, max_len: int = 5000) -> jnp.ndarray:
    position = np.arange(0, max_len, dtype=np.float32)[:, None]              # (max_len, 1)
    div_term = np.exp(
        np.arange(0, d_model, 2, dtype=np.float32) * (-np.log(10000.0) / d_model)
    )
    pe = np.zeros((max_len, d_model), dtype=np.float32)
    pe[:, 0::2] = np.sin(position * div_term)
    pe[:, 1::2] = np.cos(position * div_term)[:, : pe[:, 1::2].shape[1]]
    # unsqueeze(0).transpose(0, 1) -> (max_len, 1, d_model), like the torch buffer
    return jnp.asarray(pe[:, None, :])


# ---------------------------------------------------------------------------
# In-kernel dropout helpers (portable counter-based hash, no pltpu.prng_*)
# ---------------------------------------------------------------------------
def _mix_u32(x):
    # lowbias32 finalizer: decorrelates the flat element index into uniform bits.
    x = x ^ (x >> 16)
    x = x * jnp.uint32(0x7FEB352D)
    x = x ^ (x >> 15)
    x = x * jnp.uint32(0x846CA68B)
    x = x ^ (x >> 16)
    return x


def _dropout(y, flat_idx_u32, seed_u32, p):
    # integer-threshold compare: P(drop) = round(p * 2^32) / 2^32
    threshold = min(int(round(float(p) * 4294967296.0)), 0xFFFFFFFF)
    scale = (1.0 / (1.0 - p)) if p < 1.0 else 0.0
    bits = _mix_u32(flat_idx_u32 ^ (seed_u32 * jnp.uint32(0x9E3779B9)))
    keep = bits >= jnp.uint32(threshold)
    return jnp.where(keep, y * jnp.float32(scale), 0.0)


def _iota_u32(shape, dim):
    # int32 iota (always supported) then bit-identical cast to uint32
    return lax.broadcasted_iota(jnp.int32, shape, dim).astype(jnp.uint32)


# ---------------------------------------------------------------------------
# Kernels
# ---------------------------------------------------------------------------
def _pe_kernel_seqfirst(seed_ref, x_ref, pe_ref, o_ref, *, batch, p, train):
    # x_ref: (ts, B*D) lane-dense view, pe_ref: (ts, D)
    ts, w = x_ref.shape
    pe_row = jnp.tile(pe_ref[...], (1, batch))            # (ts, D) -> (ts, B*D)
    y = x_ref[...] + pe_row
    if train:
        row0 = (pl.program_id(0) * ts).astype(jnp.uint32)
        rows = _iota_u32((ts, w), 0) + row0
        cols = _iota_u32((ts, w), 1)
        flat = rows * jnp.uint32(w) + cols                 # absolute element index
        y = _dropout(y, flat, seed_ref[0].astype(jnp.uint32), p)
    o_ref[...] = y.astype(o_ref.dtype)


def _pe_kernel_batchfirst(seed_ref, x_ref, pe_ref, o_ref, *, seq_len, p, train):
    # x_ref: (1, ts, D), pe_ref: (ts, D) — broadcast over the batch block dim.
    _, ts, d = x_ref.shape
    y = x_ref[...] + pe_ref[...][None, :, :]
    if train:
        b = pl.program_id(0).astype(jnp.uint32)
        s0 = (pl.program_id(1) * ts).astype(jnp.uint32)
        s_idx = _iota_u32((1, ts, d), 1) + s0
        d_idx = _iota_u32((1, ts, d), 2)
        flat = (b * jnp.uint32(seq_len) + s_idx) * jnp.uint32(d) + d_idx
        y = _dropout(y, flat, seed_ref[0].astype(jnp.uint32), p)
    o_ref[...] = y.astype(o_ref.dtype)


# ---------------------------------------------------------------------------
# Tiling heuristic: ~2 MiB blocks, multiple-of-8 rows (safe for v5e/v6e/v7x)
# ---------------------------------------------------------------------------
def _pick_seq_tile(seq_len, bytes_per_row, requested=None, target_bytes=2 << 20):
    if requested is None:
        requested = max(1, target_bytes // max(int(bytes_per_row), 1))
    if requested >= seq_len:
        return int(seq_len)
    ts = (int(requested) // 8) * 8
    if ts >= 8:
        return ts
    return int(min(8, seq_len))


# ---------------------------------------------------------------------------
# Wrapper
# ---------------------------------------------------------------------------
def positional_encoding(
    x: jnp.ndarray,
    pe: jnp.ndarray,
    *,
    batch_first: bool = False,
    dropout_p: float = 0.1,
    training: bool = False,
    seed: int = 0,
    seq_tile: int | None = None,
) -> jnp.ndarray:
    """Forward pass of PositionalEncoding.

    x:  (S, B, D) if batch_first=False else (B, S, D)
    pe: (max_len, 1, D)
    """
    dropout_p = float(dropout_p)
    train = bool(training) and dropout_p > 0.0
    seed_arr = jnp.asarray([seed], dtype=jnp.int32)
    itemsize = jnp.dtype(x.dtype).itemsize

    if not batch_first:
        S, B, D = x.shape
        W = B * D
        x2 = x.reshape(S, W)                   # free reshape of contiguous (S,B,D)
        pe2 = pe[:S, 0, :]                     # (S, D)
        ts = _pick_seq_tile(S, W * itemsize, requested=seq_tile)
        grid = (pl.cdiv(S, ts),)
        kernel = functools.partial(
            _pe_kernel_seqfirst, batch=B, p=dropout_p, train=train
        )
        out2 = pl.pallas_call(
            kernel,
            out_shape=jax.ShapeDtypeStruct((S, W), x.dtype),
            grid_spec=pltpu.PrefetchScalarGridSpec(
                num_scalar_prefetch=1,
                grid=grid,
                in_specs=[
                    pl.BlockSpec((ts, W), lambda i, *_: (i, 0)),
                    pl.BlockSpec((ts, D), lambda i, *_: (i, 0)),
                ],
                out_specs=pl.BlockSpec((ts, W), lambda i, *_: (i, 0)),
            ),
            compiler_params=pltpu.CompilerParams(
                dimension_semantics=("parallel",)
            ),
        )(seed_arr, x2, pe2)
        return out2.reshape(S, B, D)

    # batch_first=True: handle (B, S, D) natively — no wrapper transposes.
    B, S, D = x.shape
    pe2 = pe[:S, 0, :]                         # (S, D)
    ts = _pick_seq_tile(S, D * itemsize, requested=seq_tile)
    grid = (B, pl.cdiv(S, ts))
    kernel = functools.partial(
        _pe_kernel_batchfirst, seq_len=S, p=dropout_p, train=train
    )
    out = pl.pallas_call(
        kernel,
        out_shape=jax.ShapeDtypeStruct((B, S, D), x.dtype),
        grid_spec=pltpu.PrefetchScalarGridSpec(
            num_scalar_prefetch=1,
            grid=grid,
            in_specs=[
                pl.BlockSpec((1, ts, D), lambda b, s, *_: (b, s, 0)),
                pl.BlockSpec((ts, D), lambda b, s, *_: (s, 0)),
            ],
            out_specs=pl.BlockSpec((1, ts, D), lambda b, s, *_: (b, s, 0)),
        ),
        compiler_params=pltpu.CompilerParams(
            dimension_semantics=("parallel", "parallel")
        ),
    )(seed_arr, x, pe2)
    return out


# ---------------------------------------------------------------------------
# Demo / smoke test
# ---------------------------------------------------------------------------
if __name__ == "__main__":
    d_model = 32
    max_len = 5000
    seq_len = 8
    batch = 2

    key = jax.random.PRNGKey(0)
    x = jax.random.normal(key, (seq_len, batch, d_model), dtype=jnp.float32)
    pe = make_positional_encoding_table(d_model, max_len)

    # ---- eval mode, seq-first (dropout is identity, like module.eval()) ----
    y = positional_encoding(x, pe, batch_first=False, dropout_p=0.1, training=False)
    y = jax.block_until_ready(y)
    y_ref = x + pe[:seq_len]
    assert y.shape == (seq_len, batch, d_model)
    assert np.allclose(np.asarray(y), np.asarray(y_ref), atol=1e-5, rtol=1e-5), \
        "seq-first eval mismatch vs reference"

    # ---- eval mode, batch_first (kernel consumes (B, S, D) directly) ----
    xb = jnp.transpose(x, (1, 0, 2))          # demo-only construction of a (B,S,D) input
    yb = positional_encoding(xb, pe, batch_first=True, dropout_p=0.1, training=False)
    yb = jax.block_until_ready(yb)
    yb_ref = xb + jnp.transpose(pe[:seq_len], (1, 0, 2))
    assert np.allclose(np.asarray(yb), np.asarray(yb_ref), atol=1e-5, rtol=1e-5), \
        "batch-first eval mismatch vs reference"

    # ---- training mode (inverted dropout): outputs are 0 or (x+pe)/(1-p) ----
    p = 0.1
    y_tr = jax.block_until_ready(
        positional_encoding(x, pe, batch_first=False, dropout_p=p, training=True, seed=123)
    )
    y_tr_np = np.asarray(y_tr)
    base = np.asarray(y_ref) / (1.0 - p)
    kept = y_tr_np != 0.0
    assert np.allclose(y_tr_np[kept], base[kept], atol=1e-5, rtol=1e-5), \
        "training-mode kept elements are not correctly scaled"

    print("KERNEL_OK")
</pallas_src>

<mosaic_0001>
module attributes {stable_mosaic.version = 11 : i64} {
  func.func @_pe_kernel_seqfirst(%arg0: i32, %arg1: memref<1xi32, #tpu.memory_space<smem>>, %arg2: memref<8x64xf32, #tpu.memory_space<vmem>>, %arg3: memref<8x32xf32, #tpu.memory_space<vmem>>, %arg4: memref<8x64xf32, #tpu.memory_space<vmem>>) attributes {dimension_semantics = [#tpu.dimension_semantics<parallel>], iteration_bounds = array<i64: 1>, scalar_prefetch = 1 : i64, scratch_operands = 0 : i64, tpu.core_type = #tpu.core_type<tc>, window_params = [{transform_indices = @transform_0, window_bounds = array<i64: 8, 64>}, {transform_indices = @transform_1, window_bounds = array<i64: 8, 32>}, {transform_indices = @transform_2, window_bounds = array<i64: 8, 64>}]} {
    %c0 = arith.constant 0 : index
    %c0_0 = arith.constant 0 : index
    %0 = vector.load %arg3[%c0, %c0_0] : memref<8x32xf32, #tpu.memory_space<vmem>>, vector<8x32xf32>
    %1 = tpu.concatenate %0, %0 in 1 : vector<8x32xf32>, vector<8x32xf32> -> vector<8x64xf32>
    %c0_1 = arith.constant 0 : index
    %c0_2 = arith.constant 0 : index
    %2 = vector.load %arg2[%c0_1, %c0_2] : memref<8x64xf32, #tpu.memory_space<vmem>>, vector<8x64xf32>
    %3 = arith.addf %2, %1 : vector<8x64xf32>
    %c0_3 = arith.constant 0 : index
    %c0_4 = arith.constant 0 : index
    %4 = vector.load %arg4[%c0_3, %c0_4] : memref<8x64xf32, #tpu.memory_space<vmem>>, vector<8x64xf32>
    tpu.vector_store %arg4[%c0_3, %c0_4], %3 {strides = array<i32>} : memref<8x64xf32, #tpu.memory_space<vmem>>, vector<8x64xf32>,
    return
  }
  func.func @transform_0(%arg0: i32, %arg1: memref<1xi32, #tpu.memory_space<smem>>) -> (i32, i32) {
    %c0_i32 = arith.constant 0 : i32
    %c0_i32_0 = arith.constant 0 : i32
    return %arg0, %c0_i32 : i32, i32
  }
  func.func @transform_1(%arg0: i32, %arg1: memref<1xi32, #tpu.memory_space<smem>>) -> (i32, i32) {
    %c0_i32 = arith.constant 0 : i32
    %c0_i32_0 = arith.constant 0 : i32
    return %arg0, %c0_i32 : i32, i32
  }
  func.func @transform_2(%arg0: i32, %arg1: memref<1xi32, #tpu.memory_space<smem>>) -> (i32, i32) {
    %c0_i32 = arith.constant 0 : i32
    %c0_i32_0 = arith.constant 0 : i32
    return %arg0, %c0_i32 : i32, i32
  }
}

</mosaic_0001>

<bundles_post_ra>
// kernel: tpu_custom_call.1
= control target key start
LH: loop header
LB: loop body
LE: loop exit
PB: predicated region body
PF: predicated region fallthrough
CT: control target
= control target key end

     0   :  { %9 = vsyncpa [#allocation5], 0  ;;  %s201_s0 = inlined_call_operand.<no memory space> [shape: s32[1], index: 0, kind: input, shape index: {}]   ;;  %s202_s1 = inlined_call_operand.hbm [shape: f32[8,64], index: 1, kind: input, shape index: {}]   ;;  %s203_s2 = inlined_call_operand.hbm [shape: f32[8,32], index: 2, kind: input, shape index: {}]   ;;  %s204_s3 = inlined_call_operand.hbm [shape: f32[8,64], index: 3, kind: output, shape index: {}]  }
   0x1   :  { %10 = vsyncpa [#allocation8], 0 }
   0x2   :  { %11 = vsyncpa [#allocation6], 0  ;;  %s141_s12 = smov [#allocation4]   ;;  %s142_s14 = smov [#allocation7]  }
   0x3   :  { %s18_s13 = sshll.u32 %s141_s12, 4  ;;  %s28_s15 = sshll.u32 %s142_s14, 4  ;;  %s19_s13 = int_to_ptr.vmem [resolvable:$true] %s18_s13  ;;  %s29_s15 = int_to_ptr.vmem [resolvable:$true] %s28_s15 }
   0x4   :  { %s69_s17 = scalar_lea.hbm %s202_s1, 128 }
   0x5   :  { %p70_p0 = scmp.ne.s32.totalorder %s202_s1, %s69_s17  ;;  %p73_p1 = scmp.lt.u32.totalorder %s69_s17, %s202_s1 }
   0x7   :  { %p75_p2 = pnand %p73_p1, %p70_p0 }
   0x9   :  { %78 = shalt.err (!%p75_p2)
}
   0xa   :  { %s79_s22 = scalar_lea.vmem %s19_s13, 128  ;;  %p84_p4 = scmp.lt.s32.totalorder %s19_s13, %s19_s13 }
   0xb   :  { %p80_p3 = scmp.ne.s32.totalorder %s19_s13, %s79_s22  ;;  %p85_p5 = scmp.lt.s32.totalorder %s79_s22, %s79_s22 }
   0xd   :  { %p86_p6 = por %p85_p5, %p84_p4 }
   0xf   :  { %p87_p7 = pnand %p86_p6, %p80_p3 }
  0x11   :  { %90 = shalt.err (!%p87_p7)
}
  0x12   :  { %21 = dma.hbm_to_vmem [thread:$0]  %s202_s1, 128, %s19_s13, [#allocation5]  }
  0x13   :  { %s91_s27 = scalar_lea.hbm %s203_s2, 128 }
  0x14   :  { %p92_p8 = scmp.ne.s32.totalorder %s203_s2, %s91_s27  ;;  %p95_p9 = scmp.lt.u32.totalorder %s91_s27, %s203_s2 }
  0x16   :  { %p97_p10 = pnand %p95_p9, %p92_p8 }
  0x18   :  { %100 = shalt.err (!%p97_p10)
}
  0x19   :  { %s101_s5 = scalar_lea.vmem %s29_s15, 128  ;;  %p106_p12 = scmp.lt.s32.totalorder %s29_s15, %s29_s15 }
  0x1a   :  { %p102_p11 = scmp.ne.s32.totalorder %s29_s15, %s101_s5  ;;  %p107_p13 = scmp.lt.s32.totalorder %s101_s5, %s101_s5 }
  0x1c   :  { %p108_p0 = por %p107_p13, %p106_p12 }
  0x1e   :  { %p109_p1 = pnand %p108_p0, %p102_p11 }
  0x20   :  { %112 = shalt.err (!%p109_p1)
}
  0x21   :  { %31 = dma.hbm_to_vmem [thread:$0]  %s203_s2, 128, %s29_s15, [#allocation8]  }
  0x22   :  { %135 = dma.done.wait [#allocation5], 128  }
  0x23   :  { %136 = vsyncadd [#allocation5], 4294967168 }
  0x24   :  { %137 = dma.done.wait [#allocation8], 128  }
  0x25   :  { %138 = vsyncadd [#allocation8], 4294967168  ;;  %v38_v0 = vld [vmem:[#allocation7] sm:$0xff]  ;;  %s143_s7 = smov 32   ;;  %vm43_vm0 = vcmask 261120   ;;  %v45_v1 = vld [vmem:[#allocation4] sm:$0xff] }
  0x26   :  { %40 = vrot.lane.b32.xlu0 %v38_v0, %s143_s7  ;;  %s144_s8 = smov [#allocation9]   ;;  %vm47_vm1 = vcmask 523264  }
  0x27   :  { %s55_s9 = sshll.u32 %s144_s8, 4  ;;  %s56_s9 = int_to_ptr.vmem [resolvable:$true] %s55_s9 }
  0x28   :  { %s113_s10 = scalar_lea.vmem %s56_s9, 128  ;;  %p118_p3 = scmp.lt.s32.totalorder %s56_s9, %s56_s9 }
  0x29   :  { %p114_p2 = scmp.ne.s32.totalorder %s56_s9, %s113_s10  ;;  %p119_p4 = scmp.lt.s32.totalorder %s113_s10, %s113_s10 }
  0x2b   :  { %p120_p5 = por %p119_p4, %p118_p3 }
  0x2d   :  { %p121_p6 = pnand %p120_p5, %p114_p2 }
  0x98   :  { %v41_v2 = vpop.permute.xlu0 %40 }
  0x99   :  { %v44_v3 = vsel %vm43_vm0, %v38_v0, %v41_v2 }
  0x9a   :  { %v46_v4 = vadd.f32 %v45_v1, %v44_v3 }
  0x9c   :  { %48 = vst.msk [vmem:[#allocation9] sm:$0xff] %vm47_vm1, %v46_v4 }
  0x9d   :  { %124 = shalt.err (!%p121_p6)
}
  0x9e   :  { %s125_s12 = scalar_lea.hbm %s204_s3, 128 }
  0x9f   :  { %p126_p7 = scmp.ne.s32.totalorder %s204_s3, %s125_s12  ;;  %p129_p8 = scmp.lt.u32.totalorder %s125_s12, %s204_s3 }
  0xa1   :  { %p131_p9 = pnand %p129_p8, %p126_p7 }
  0xa3   :  { %134 = shalt.err (!%p131_p9)
}
  0xa4   :  { %58 = dma.vmem_to_hbm [thread:$0]  %s56_s9, 128, %s204_s3, [#allocation6]  }
  0xa5   :  { %139 = dma.done.wait [#allocation6], 128  }
  0xa6   :  { %140 = vsyncadd [#allocation6], 4294967168 }
  0xa7   :  { %62 = vsyncpa [#allocation5], 1 }
  0xa8   :  { %63 = vsyncpa [#allocation8], 1 }
  0xa9   :  { %64 = vsyncpa [#allocation6], 1 }

</bundles_post_ra>
